<compile_context>
chip_gen: v7x
topology: tpu7x:2x2x1
jax: 0.10.0
libtpu: 0.0.40
codegen_flags: <defaults>
</compile_context>

<pallas_src>
import functools

import jax
import jax.numpy as jnp
from jax import lax
from jax.experimental import pallas as pl
from jax.experimental.pallas import tpu as pltpu


def clip_ebc_kernel(x_ref, we_ref, be_ref, wd_ref, bd_ref, wp_ref, bp_ref,
                    txt_ref, oa_ref, shift_ref, out_ref):
    """One tile of TILE_M spatial positions, channel-major (channels x lanes).

    x_ref    : (K, TILE_M)  bf16  im2col'd patches (one column per position)
    we/wd/wp : (Cout, Cin)  bf16  conv weights as GEMM matrices
    be/bd/bp : (Cout, 1)    f32   biases (broadcast over lanes)
    txt_ref  : (N, D)       bf16  exp(logit_scale) * normalize(text_features)
    oa_ref   : (2, N)       f32   row 0 = ones, row 1 = anchor points
    shift_ref: (1, 1)       f32   exp(logit_scale)  (softmax shift bound)
    out_ref  : (1, TILE_M)  f32   expected count per spatial position
    """
    f32 = jnp.float32
    cdt = we_ref.dtype

    # --- synthetic image_encoder: patch conv (as GEMM) + ReLU ---------------
    feat = jnp.dot(we_ref[...], x_ref[...], preferred_element_type=f32)
    feat = jnp.maximum(feat + be_ref[...], 0.0)                     # (Cf, TM)

    # --- image_decoder: 1x1 conv + ReLU -------------------------------------
    dec = jnp.dot(wd_ref[...], feat.astype(cdt), preferred_element_type=f32)
    dec = jnp.maximum(dec + bd_ref[...], 0.0)                       # (Cd, TM)

    # --- projection: 1x1 conv ------------------------------------------------
    img = jnp.dot(wp_ref[...], dec.astype(cdt), preferred_element_type=f32)
    img = img + bp_ref[...]                                         # (D, TM)

    # --- F.normalize(p=2) over the channel dim: x / max(||x||, 1e-12) --------
    nsq = jnp.sum(img * img, axis=0, keepdims=True)                 # (1, TM)
    img_n = img * lax.rsqrt(jnp.maximum(nsq, 1e-24))

    # --- logits = exp(logit_scale) * text_n @ image_n (scale folded in txt) --
    # bf16 x bf16 on the MXU, f32 accumulation.
    logits = jnp.dot(txt_ref[...], img_n.astype(cdt),
                     preferred_element_type=f32)                    # (N, TM)

    # --- softmax fused with the anchor-weighted expected count ---------------
    # |logits| <= exp(logit_scale) (unit-norm columns, rows of norm s), so a
    # constant shift by s replaces the per-column XLU max-reduce exactly
    # (softmax is shift invariant).  Clamp the exponent so an all-underflow
    # column can never yield 0/0.
    e = jnp.exp(jnp.maximum(logits - shift_ref[...], -80.0))        # (N, TM)
    red = jnp.dot(oa_ref[...], e, preferred_element_type=f32)       # (2, TM)
    out_ref[...] = red[1:2, :] * pl.reciprocal(red[0:1, :], approx=True)


def _round_up(x, m):
    return ((x + m - 1) // m) * m


def _vmem_capacity_bytes():
    try:
        return int(pltpu.get_tpu_info().vmem_capacity_bytes)
    except Exception:
        return 64 * 1024 * 1024  # conservative (v7x-like) fallback


def _pick_tile_m(m_rows, tile_m_max, per_col_bytes, vmem_budget):
    """Largest lane tile that (a) is a multiple of 128, (b) fits the VMEM
    budget, and (c) keeps the grid >= 2 steps when possible (v7x megacore)."""
    fit = max(128, (vmem_budget // max(per_col_bytes, 1)) // 128 * 128)
    half = _round_up(max(pl.cdiv(m_rows, 2), 1), 128)
    return max(128, min(_round_up(tile_m_max, 128), fit, half))


def clip_ebc_forward(x, params, *, tile_m=None, compute_dtype=jnp.bfloat16):
    """x: (B, C, H, W) float32 NCHW.  Returns (B, 1, H//P, W//P) float32."""
    B, C, H, W = x.shape
    P = params["patch"]
    assert H % P == 0 and W % P == 0
    Hp, Wp = H // P, W // P
    M = B * Hp * Wp
    K = P * P * C
    N, D = params["text_features"].shape
    c_feat = params["w_embed"].shape[1]
    c_dec = params["w_dec"].shape[1]

    # Generation-aware tiling / VMEM budget (v5e/v6e: 128 MiB; v7x: 64 MiB).
    vmem_cap = _vmem_capacity_bytes()
    if vmem_cap >= 100 * 1024 * 1024:
        tile_m_max = 2048 if tile_m is None else tile_m
        vmem_limit = 64 * 1024 * 1024
    else:
        tile_m_max = 1024 if tile_m is None else tile_m
        vmem_limit = 32 * 1024 * 1024

    # Per-lane VMEM cost: double-buffered bf16 (K, tm) input column plus the
    # f32 intermediates (Cf/Cd/D/N rows) the compiler keeps live.
    per_col_bytes = 2 * (2 * K) + 4 * (c_feat + c_dec + D + N + 4)
    tm = _pick_tile_m(M, tile_m_max, per_col_bytes, vmem_limit // 2)
    grid_m = pl.cdiv(M, tm)
    m_out = grid_m * tm  # padded output only (lane-dense unmasked stores)

    # im2col, channel-major (K, M), in bf16 — single fused convert+transpose
    # pass, NO explicit pad (the trailing partial block's masked columns only
    # feed discarded outputs: all kernel math is strictly per-column).
    # K index order is (ph, pw, c); column order is (b, hp, wp).
    xt = (x.astype(compute_dtype)
            .reshape(B, C, Hp, P, Wp, P)
            .transpose(3, 5, 1, 0, 2, 4)
            .reshape(K, M))

    # Weights as (Cout, Cin) bf16 GEMM matrices; biases as (Cout, 1) f32.
    w_em = params["w_embed"].T.astype(compute_dtype)
    w_de = params["w_dec"].T.astype(compute_dtype)
    w_pr = params["w_proj"].T.astype(compute_dtype)
    b_em = params["b_embed"].T.astype(jnp.float32)
    b_de = params["b_dec"].T.astype(jnp.float32)
    b_pr = params["b_proj"].T.astype(jnp.float32)

    # Hoist all loop-invariant text-side work out of the kernel: normalize
    # text features, fold exp(logit_scale) in, and cast to bf16 for the MXU.
    txt = params["text_features"].astype(jnp.float32)                 # (N, D)
    txt_n = txt * lax.rsqrt(
        jnp.maximum(jnp.sum(txt * txt, axis=-1, keepdims=True), 1e-24))
    scale = jnp.exp(params["logit_scale"][0, 0])
    txt_s = (scale * txt_n).astype(compute_dtype)                     # (N, D)
    shift = scale.reshape(1, 1).astype(jnp.float32)                   # (1, 1)
    oa = jnp.concatenate(
        [jnp.ones((1, N), jnp.float32),
         params["anchor_points"].reshape(1, N).astype(jnp.float32)],
        axis=0)                                                        # (2, N)

    def full(a):  # whole (small) array resident every grid step
        return pl.BlockSpec(a.shape, lambda i: (0, 0))

    out = pl.pallas_call(
        clip_ebc_kernel,
        out_shape=jax.ShapeDtypeStruct((1, m_out), jnp.float32),
        grid=(grid_m,),
        in_specs=[
            pl.BlockSpec((K, tm), lambda i: (0, i)),   # streamed im2col input
            full(w_em), full(b_em),
            full(w_de), full(b_de),
            full(w_pr), full(b_pr),
            full(txt_s), full(oa), full(shift),
        ],
        out_specs=pl.BlockSpec((1, tm), lambda i: (0, i)),  # lane-dense output
        compiler_params=pltpu.CompilerParams(
            dimension_semantics=("parallel",),
            vmem_limit_bytes=vmem_limit,
        ),
    )(xt, w_em, b_em, w_de, b_de, w_pr, b_pr, txt_s, oa, shift)

    # (1, grid*tm) -> drop tail padding -> NCHW (B, 1, Hp, Wp)
    return out[0, :M].reshape(B, Hp, Wp)[:, None, :, :]


def reference_forward(x, params, compute_dtype=jnp.bfloat16):
    """Pure-JAX reference mirroring the kernel's precision policy
    (bf16 streamed operands and logits-matmul inputs, f32 accumulation)."""
    B, C, H, W = x.shape
    P = params["patch"]
    Hp, Wp = H // P, W // P
    f32 = jnp.float32
    xc = (x.reshape(B, C, Hp, P, Wp, P)
           .transpose(0, 2, 4, 3, 5, 1)
           .reshape(B * Hp * Wp, P * P * C)).astype(compute_dtype)
    feat = jnp.maximum(
        jnp.dot(xc, params["w_embed"].astype(compute_dtype),
                preferred_element_type=f32) + params["b_embed"], 0.0)
    dec = jnp.maximum(
        jnp.dot(feat.astype(compute_dtype), params["w_dec"].astype(compute_dtype),
                preferred_element_type=f32) + params["b_dec"], 0.0)
    img = jnp.dot(dec.astype(compute_dtype), params["w_proj"].astype(compute_dtype),
                  preferred_element_type=f32) + params["b_proj"]
    img_n = img / jnp.maximum(
        jnp.sqrt(jnp.sum(img * img, -1, keepdims=True)), 1e-12)
    txt = params["text_features"]
    txt_n = txt / jnp.maximum(
        jnp.sqrt(jnp.sum(txt * txt, -1, keepdims=True)), 1e-12)
    scale = jnp.exp(params["logit_scale"][0, 0])
    logits = jnp.dot(img_n.astype(compute_dtype),
                     (scale * txt_n).astype(compute_dtype).T,
                     preferred_element_type=f32)
    probs = jax.nn.softmax(logits, axis=-1)
    exp = jnp.sum(probs * params["anchor_points"], -1, keepdims=True)
    return exp.reshape(B, Hp, Wp, 1).transpose(0, 3, 1, 2)


def make_params(key, *, c_in=4, patch=4, c_feat=32, c_dec=32, d=32, n_bins=8):
    ks = jax.random.split(key, 8)
    k_patch = patch * patch * c_in
    return {
        "patch": patch,
        "w_embed": jax.random.normal(ks[0], (k_patch, c_feat), jnp.float32) * 0.1,
        "b_embed": jax.random.normal(ks[1], (1, c_feat), jnp.float32) * 0.1,
        "w_dec":   jax.random.normal(ks[2], (c_feat, c_dec), jnp.float32) * 0.1,
        "b_dec":   jax.random.normal(ks[3], (1, c_dec), jnp.float32) * 0.1,
        "w_proj":  jax.random.normal(ks[4], (c_dec, d), jnp.float32) * 0.1,
        "b_proj":  jax.random.normal(ks[5], (1, d), jnp.float32) * 0.1,
        # precomputed text features, one per count bin (N, D)
        "text_features": jax.random.normal(ks[6], (n_bins, d), jnp.float32),
        # anchor points = representative count of each bin, (1, N)
        "anchor_points": jnp.arange(n_bins, dtype=jnp.float32)[None, :],
        # CLIP init: log(1/0.07)
        "logit_scale": jnp.full((1, 1), jnp.log(1.0 / 0.07), jnp.float32),
    }


if __name__ == "__main__":
    key = jax.random.PRNGKey(0)
    k_x, k_p = jax.random.split(key)
    B, C, H, W = 2, 4, 16, 16
    x = jax.random.normal(k_x, (B, C, H, W), jnp.float32)
    params = make_params(k_p, c_in=C)

    fwd = jax.jit(functools.partial(clip_ebc_forward, params=params))
    out = jax.block_until_ready(fwd(x))

    ref = reference_forward(x, params)
    assert out.shape == (B, 1, H // params["patch"], W // params["patch"])
    # bf16 streamed operands + bf16 logits matmul + EUP rsqrt / approx
    # reciprocal, with anchor values up to n_bins-1 -> compare against the
    # matching-precision reference with a correspondingly relaxed tolerance.
    max_diff = float(jnp.max(jnp.abs(out - ref)))
    assert max_diff < 5e-2, f"max diff {max_diff}"
    print("KERNEL_OK")
</pallas_src>

<mosaic_0001>
module attributes {stable_mosaic.version = 11 : i64} {
  func.func @clip_ebc_kernel(%arg0: i32, %arg1: memref<64x128xbf16, #tpu.memory_space<vmem>>, %arg2: memref<32x64xbf16, #tpu.memory_space<vmem>>, %arg3: memref<32x1xf32, #tpu.memory_space<vmem>>, %arg4: memref<32x32xbf16, #tpu.memory_space<vmem>>, %arg5: memref<32x1xf32, #tpu.memory_space<vmem>>, %arg6: memref<32x32xbf16, #tpu.memory_space<vmem>>, %arg7: memref<32x1xf32, #tpu.memory_space<vmem>>, %arg8: memref<8x32xbf16, #tpu.memory_space<vmem>>, %arg9: memref<2x8xf32, #tpu.memory_space<vmem>>, %arg10: memref<1x1xf32, #tpu.memory_space<vmem>>, %arg11: memref<1x128xf32, #tpu.memory_space<vmem>>) attributes {dimension_semantics = [#tpu.dimension_semantics<parallel>], iteration_bounds = array<i64: 1>, scalar_prefetch = 0 : i64, scratch_operands = 0 : i64, tpu.core_type = #tpu.core_type<tc>, window_params = [{transform_indices = @transform_0, window_bounds = array<i64: 64, 128>}, {pipeline_mode = #tpu.pipeline_mode<synchronous>, transform_indices = @transform_1, window_bounds = array<i64: 32, 64>}, {pipeline_mode = #tpu.pipeline_mode<synchronous>, transform_indices = @transform_2, window_bounds = array<i64: 32, 1>}, {pipeline_mode = #tpu.pipeline_mode<synchronous>, transform_indices = @transform_3, window_bounds = array<i64: 32, 32>}, {pipeline_mode = #tpu.pipeline_mode<synchronous>, transform_indices = @transform_4, window_bounds = array<i64: 32, 1>}, {pipeline_mode = #tpu.pipeline_mode<synchronous>, transform_indices = @transform_5, window_bounds = array<i64: 32, 32>}, {pipeline_mode = #tpu.pipeline_mode<synchronous>, transform_indices = @transform_6, window_bounds = array<i64: 32, 1>}, {pipeline_mode = #tpu.pipeline_mode<synchronous>, transform_indices = @transform_7, window_bounds = array<i64: 8, 32>}, {pipeline_mode = #tpu.pipeline_mode<synchronous>, transform_indices = @transform_8, window_bounds = array<i64: 2, 8>}, {pipeline_mode = #tpu.pipeline_mode<synchronous>, transform_indices = @transform_9, window_bounds = array<i64: 1, 1>}, {transform_indices = @transform_10, window_bounds = array<i64: 1, 128>}]} {
    %c0 = arith.constant 0 : index
    %c0_0 = arith.constant 0 : index
    %0 = vector.load %arg2[%c0, %c0_0] : memref<32x64xbf16, #tpu.memory_space<vmem>>, vector<32x64xbf16>
    %c0_1 = arith.constant 0 : index
    %c0_2 = arith.constant 0 : index
    %1 = vector.load %arg1[%c0_1, %c0_2] : memref<64x128xbf16, #tpu.memory_space<vmem>>, vector<64x128xbf16>
    %cst = arith.constant dense<0.000000e+00> : vector<32x128xf32>
    %2 = tpu.matmul %0, %1, %cst {dimension_numbers = #tpu.dot_dimension_numbers<[1], [0], [0], [1], [0, 0, 1, 1], [], []>} : vector<32x64xbf16>, vector<64x128xbf16>, vector<32x128xf32> -> vector<32x128xf32>
    %c0_3 = arith.constant 0 : index
    %c0_4 = arith.constant 0 : index
    %3 = vector.load %arg3[%c0_3, %c0_4] : memref<32x1xf32, #tpu.memory_space<vmem>>, vector<32x1xf32>
    %4 = vector.broadcast %3 : vector<32x1xf32> to vector<32x128xf32>
    %5 = arith.addf %2, %4 : vector<32x128xf32>
    %cst_5 = arith.constant 0.000000e+00 : f32
    %6 = vector.broadcast %cst_5 : f32 to vector<32x128xf32>
    %7 = arith.maximumf %5, %6 : vector<32x128xf32>
    %c0_6 = arith.constant 0 : index
    %c0_7 = arith.constant 0 : index
    %8 = vector.load %arg4[%c0_6, %c0_7] : memref<32x32xbf16, #tpu.memory_space<vmem>>, vector<32x32xbf16>
    %9 = arith.truncf %7 : vector<32x128xf32> to vector<32x128xbf16>
    %cst_8 = arith.constant dense<0.000000e+00> : vector<32x128xf32>
    %10 = tpu.matmul %8, %9, %cst_8 {dimension_numbers = #tpu.dot_dimension_numbers<[1], [0], [0], [1], [0, 0, 1, 1], [], []>} : vector<32x32xbf16>, vector<32x128xbf16>, vector<32x128xf32> -> vector<32x128xf32>
    %c0_9 = arith.constant 0 : index
    %c0_10 = arith.constant 0 : index
    %11 = vector.load %arg5[%c0_9, %c0_10] : memref<32x1xf32, #tpu.memory_space<vmem>>, vector<32x1xf32>
    %12 = vector.broadcast %11 : vector<32x1xf32> to vector<32x128xf32>
    %13 = arith.addf %10, %12 : vector<32x128xf32>
    %cst_11 = arith.constant 0.000000e+00 : f32
    %14 = vector.broadcast %cst_11 : f32 to vector<32x128xf32>
    %15 = arith.maximumf %13, %14 : vector<32x128xf32>
    %c0_12 = arith.constant 0 : index
    %c0_13 = arith.constant 0 : index
    %16 = vector.load %arg6[%c0_12, %c0_13] : memref<32x32xbf16, #tpu.memory_space<vmem>>, vector<32x32xbf16>
    %17 = arith.truncf %15 : vector<32x128xf32> to vector<32x128xbf16>
    %cst_14 = arith.constant dense<0.000000e+00> : vector<32x128xf32>
    %18 = tpu.matmul %16, %17, %cst_14 {dimension_numbers = #tpu.dot_dimension_numbers<[1], [0], [0], [1], [0, 0, 1, 1], [], []>} : vector<32x32xbf16>, vector<32x128xbf16>, vector<32x128xf32> -> vector<32x128xf32>
    %c0_15 = arith.constant 0 : index
    %c0_16 = arith.constant 0 : index
    %19 = vector.load %arg7[%c0_15, %c0_16] : memref<32x1xf32, #tpu.memory_space<vmem>>, vector<32x1xf32>
    %20 = vector.broadcast %19 : vector<32x1xf32> to vector<32x128xf32>
    %21 = arith.addf %18, %20 : vector<32x128xf32>
    %22 = arith.mulf %21, %21 : vector<32x128xf32>
    %cst_17 = arith.constant dense<0.000000e+00> : vector<128xf32>
    %23 = vector.multi_reduction <add>, %22, %cst_17 [0] : vector<32x128xf32> to vector<128xf32>
    %24 = vector.shape_cast %23 : vector<128xf32> to vector<1x128xf32>
    %cst_18 = arith.constant 1.000000e-24 : f32
    %25 = vector.broadcast %cst_18 : f32 to vector<1x128xf32>
    %26 = arith.maximumf %24, %25 : vector<1x128xf32>
    %27 = math.rsqrt %26 : vector<1x128xf32>
    %28 = vector.broadcast %27 : vector<1x128xf32> to vector<32x128xf32>
    %29 = arith.mulf %21, %28 : vector<32x128xf32>
    %c0_19 = arith.constant 0 : index
    %c0_20 = arith.constant 0 : index
    %30 = vector.load %arg8[%c0_19, %c0_20] : memref<8x32xbf16, #tpu.memory_space<vmem>>, vector<8x32xbf16>
    %31 = arith.truncf %29 : vector<32x128xf32> to vector<32x128xbf16>
    %cst_21 = arith.constant dense<0.000000e+00> : vector<8x128xf32>
    %32 = tpu.matmul %30, %31, %cst_21 {dimension_numbers = #tpu.dot_dimension_numbers<[1], [0], [0], [1], [0, 0, 1, 1], [], []>} : vector<8x32xbf16>, vector<32x128xbf16>, vector<8x128xf32> -> vector<8x128xf32>
    %c0_22 = arith.constant 0 : index
    %c0_23 = arith.constant 0 : index
    %33 = vector.load %arg10[%c0_22, %c0_23] : memref<1x1xf32, #tpu.memory_space<vmem>>, vector<1x1xf32>
    %34 = vector.broadcast %33 : vector<1x1xf32> to vector<8x128xf32>
    %35 = arith.subf %32, %34 : vector<8x128xf32>
    %cst_24 = arith.constant -8.000000e+01 : f32
    %36 = vector.broadcast %cst_24 : f32 to vector<8x128xf32>
    %37 = arith.maximumf %35, %36 : vector<8x128xf32>
    %38 = math.exp %37 : vector<8x128xf32>
    %c0_25 = arith.constant 0 : index
    %c0_26 = arith.constant 0 : index
    %39 = vector.load %arg9[%c0_25, %c0_26] : memref<2x8xf32, #tpu.memory_space<vmem>>, vector<2x8xf32>
    %cst_27 = arith.constant dense<0.000000e+00> : vector<2x128xf32>
    %40 = tpu.matmul %39, %38, %cst_27 {dimension_numbers = #tpu.dot_dimension_numbers<[1], [0], [0], [1], [0, 0, 1, 1], [], []>} : vector<2x8xf32>, vector<8x128xf32>, vector<2x128xf32> -> vector<2x128xf32>
    %41 = vector.extract_strided_slice %40 {offsets = [1, 0], sizes = [1, 128], strides = [1, 1]} : vector<2x128xf32> to vector<1x128xf32>
    %42 = vector.extract_strided_slice %40 {offsets = [0, 0], sizes = [1, 128], strides = [1, 1]} : vector<2x128xf32> to vector<1x128xf32>
    %43 = tpu.reciprocal %42 {approx = true} : vector<1x128xf32> -> vector<1x128xf32>
    %44 = arith.mulf %41, %43 : vector<1x128xf32>
    %c0_28 = arith.constant 0 : index
    %c0_29 = arith.constant 0 : index
    %45 = vector.load %arg11[%c0_28, %c0_29] : memref<1x128xf32, #tpu.memory_space<vmem>>, vector<1x128xf32>
    tpu.vector_store %arg11[%c0_28, %c0_29], %44 {strides = array<i32>} : memref<1x128xf32, #tpu.memory_space<vmem>>, vector<1x128xf32>,
    return
  }
  func.func @transform_0(%arg0: i32) -> (i32, i32) {
    %c0_i32 = arith.constant 0 : i32
    %c0_i32_0 = arith.constant 0 : i32
    return %c0_i32, %arg0 : i32, i32
  }
  func.func @transform_1(%arg0: i32) -> (i32, i32) {
    %c0_i32 = arith.constant 0 : i32
    %c0_i32_0 = arith.constant 0 : i32
    %c0_i32_1 = arith.constant 0 : i32
    return %c0_i32, %c0_i32_0 : i32, i32
  }
  func.func @transform_2(%arg0: i32) -> (i32, i32) {
    %c0_i32 = arith.constant 0 : i32
    %c0_i32_0 = arith.constant 0 : i32
    %c0_i32_1 = arith.constant 0 : i32
    return %c0_i32, %c0_i32_0 : i32, i32
  }
  func.func @transform_3(%arg0: i32) -> (i32, i32) {
    %c0_i32 = arith.constant 0 : i32
    %c0_i32_0 = arith.constant 0 : i32
    %c0_i32_1 = arith.constant 0 : i32
    return %c0_i32, %c0_i32_0 : i32, i32
  }
  func.func @transform_4(%arg0: i32) -> (i32, i32) {
    %c0_i32 = arith.constant 0 : i32
    %c0_i32_0 = arith.constant 0 : i32
    %c0_i32_1 = arith.constant 0 : i32
    return %c0_i32, %c0_i32_0 : i32, i32
  }
  func.func @transform_5(%arg0: i32) -> (i32, i32) {
    %c0_i32 = arith.constant 0 : i32
    %c0_i32_0 = arith.constant 0 : i32
    %c0_i32_1 = arith.constant 0 : i32
    return %c0_i32, %c0_i32_0 : i32, i32
  }
  func.func @transform_6(%arg0: i32) -> (i32, i32) {
    %c0_i32 = arith.constant 0 : i32
    %c0_i32_0 = arith.constant 0 : i32
    %c0_i32_1 = arith.constant 0 : i32
    return %c0_i32, %c0_i32_0 : i32, i32
  }
  func.func @transform_7(%arg0: i32) -> (i32, i32) {
    %c0_i32 = arith.constant 0 : i32
    %c0_i32_0 = arith.constant 0 : i32
    %c0_i32_1 = arith.constant 0 : i32
    return %c0_i32, %c0_i32_0 : i32, i32
  }
  func.func @transform_8(%arg0: i32) -> (i32, i32) {
    %c0_i32 = arith.constant 0 : i32
    %c0_i32_0 = arith.constant 0 : i32
    %c0_i32_1 = arith.constant 0 : i32
    return %c0_i32, %c0_i32_0 : i32, i32
  }
  func.func @transform_9(%arg0: i32) -> (i32, i32) {
    %c0_i32 = arith.constant 0 : i32
    %c0_i32_0 = arith.constant 0 : i32
    %c0_i32_1 = arith.constant 0 : i32
    return %c0_i32, %c0_i32_0 : i32, i32
  }
  func.func @transform_10(%arg0: i32) -> (i32, i32) {
    %c0_i32 = arith.constant 0 : i32
    %c0_i32_0 = arith.constant 0 : i32
    return %c0_i32, %arg0 : i32, i32
  }
}

</mosaic_0001>

<bundles_post_ra>
// kernel: squeeze.1
= control target key start
LH: loop header
LB: loop body
LE: loop exit
PB: predicated region body
PF: predicated region fallthrough
CT: control target
= control target key end

     0   :  { %s146_s0 = inlined_call_operand.vmem [shape: f32[32], index: 0, kind: input, shape index: {}]   ;;  %s147_s1 = inlined_call_operand.hbm [shape: f32[2,1,4,4], index: 1, kind: output, shape index: {}]  }
   0x1   :  { %v5_v0 = vld [vmem:[%s146_s0] sm:$0x1] }
   0x2   :  { %6 = vst [vmem:[#allocation3] sm:$0x1] %v5_v0 }
   0x3   :  { %2 = vsyncpa [#allocation1], 0  ;;  %s105_s0 = smov 124   ;;  %s106_s8 = smov 116   ;;  %vm8_vm0 = vcmask 31744  }
   0x4   :  { %s107_s9 = smov 120   ;;  %s108_s10 = smov 112  }
   0x5   :  { %s109_s11 = smov 108   ;;  %s110_s12 = smov 104  }
   0x6   :  { %s111_s13 = smov 100   ;;  %s112_s14 = smov [#allocation0]  }
   0x7   :  { %s67_s15 = sshll.u32 %s112_s14, 4  ;;  %s68_s15 = int_to_ptr.vmem [resolvable:$true] %s67_s15 }
   0x8   :  { %s81_s16 = scalar_lea.vmem %s68_s15, 128  ;;  %p86_p1 = scmp.lt.s32.totalorder %s68_s15, %s68_s15 }
   0x9   :  { %v10_v1 = vld [vmem:[#allocation3] sm:$0x1]   ;;  %p82_p0 = scmp.ne.s32.totalorder %s68_s15, %s81_s16  ;;  %p87_p2 = scmp.lt.s32.totalorder %s81_s16, %s81_s16 }
   0xa   :  { %v22_v2 = vld [vmem:[#allocation3] sm:$0x1]   ;;  %11 = vrot.lane.b32.xlu0 %v10_v1, %s105_s0 }
   0xb   :  { %23 = vrot.lane.b32.xlu1 %v22_v2, %s106_s8  ;;  %v16_v3 = vld [vmem:[#allocation3] sm:$0x1]   ;;  %p88_p3 = por %p87_p2, %p86_p1 }
   0xc   :  { %v28_v4 = vld [vmem:[#allocation3] sm:$0x1]  }
   0xd   :  { %v7_v5 = vld [vmem:[#allocation3] sm:$0x1]   ;;  %p89_p4 = pnand %p88_p3, %p82_p0 }
   0xe   :  { %9 = vst.msk [vmem:[#allocation2] sm:$0x1] %vm8_vm0, %v7_v5   ;;  %17 = vrot.lane.b32.xlu0 %v16_v3, %s107_s9  ;;  %v34_v6 = vld [vmem:[#allocation3] sm:$0x1]  }
   0xf   :  { %29 = vrot.lane.b32.xlu1 %v28_v4, %s108_s10  ;;  %v40_v7 = vld [vmem:[#allocation3] sm:$0x1]  }
  0x10   :  { %v46_v8 = vld [vmem:[#allocation3] sm:$0x1]  }
  0x12   :  { %35 = vrot.lane.b32.xlu0 %v34_v6, %s109_s11 }
  0x13   :  { %41 = vrot.lane.b32.xlu1 %v40_v7, %s110_s12 }
  0x16   :  { %47 = vrot.lane.b32.xlu0 %v46_v8, %s111_s13 }
  0x7c   :  { %v12_v9 = vpop.permute.xlu0 %11  }
  0x7d   :  { %v24_v10 = vpop.permute.xlu1 %23   ;;  %15 = vst.msk [vmem:[#allocation2 + $0x1] sm:$0x1] %vm8_vm0, %v12_v9  }
  0x7e   :  { %27 = vst.msk [vmem:[#allocation2 + $0x3] sm:$0x1] %vm8_vm0, %v24_v10  }
  0x80   :  { %v18_v11 = vpop.permute.xlu0 %17  }
  0x81   :  { %v30_v12 = vpop.permute.xlu1 %29   ;;  %21 = vst.msk [vmem:[#allocation2 + $0x2] sm:$0x1] %vm8_vm0, %v18_v11  }
  0x82   :  { %33 = vst.msk [vmem:[#allocation2 + $0x8] sm:$0x1] %vm8_vm0, %v30_v12  }
  0x84   :  { %v36_v13 = vpop.permute.xlu0 %35  }
  0x85   :  { %v42_v14 = vpop.permute.xlu1 %41   ;;  %39 = vst.msk [vmem:[#allocation2 + $0x9] sm:$0x1] %vm8_vm0, %v36_v13  }
  0x86   :  { %45 = vst.msk [vmem:[#allocation2 + $0xa] sm:$0x1] %vm8_vm0, %v42_v14  }
  0x88   :  { %v48_v15 = vpop.permute.xlu0 %47   ;;  %v55_v16 = vld [vmem:[#allocation2] sm:$0xf] }
  0x89   :  { %51 = vst.msk [vmem:[#allocation2 + $0xb] sm:$0x1] %vm8_vm0, %v48_v15   ;;  %57 = vst [vmem:[#allocation0] sm:$0xf] %v55_v16 }
  0x90   :  { %v59_v17 = vld [vmem:[#allocation2 + $0x8] sm:$0xf] }
  0x91   :  { %62 = vst [vmem:[#allocation0 + $0x4] sm:$0xf] %v59_v17 }
  0x92   :  { %92 = shalt.err (!%p89_p4)
}
  0x93   :  { %s93_s19 = scalar_lea.hbm %s147_s1, 128 }
  0x94   :  { %p94_p5 = scmp.ne.s32.totalorder %s147_s1, %s93_s19  ;;  %p97_p6 = scmp.lt.u32.totalorder %s93_s19, %s147_s1 }
  0x96   :  { %p99_p7 = pnand %p97_p6, %p94_p5 }
  0x98   :  { %102 = shalt.err (!%p99_p7)
}
  0x99   :  { %70 = dma.vmem_to_hbm [thread:$0]  %s68_s15, 128, %s147_s1, [#allocation1]  }
  0x9a   :  { %103 = dma.done.wait [#allocation1], 128  }
  0x9b   :  { %104 = vsyncadd [#allocation1], 4294967168 }
  0x9c   :  { %72 = vsyncpa [#allocation1], 1 }

// kernel: clip_ebc_forward.1
= control target key start
LH: loop header
LB: loop body
LE: loop exit
PB: predicated region body
PF: predicated region fallthrough
CT: control target
= control target key end

     0   :  { %v627_v1 = vmov 0   ;;  %vm108_vm0 = vcmask 523264   ;;  %vm208_vm1 = vcmask 261120   ;;  %v628_v61 = vmov 0.0   ;;  %s770_s0 = inlined_call_operand.vmem [shape: bf16[64,32], index: 0, kind: input, shape index: {}]   ;;  %s771_s9 = inlined_call_operand.<no memory space> [shape: f32[1,1], index: 9, kind: input, shape index: {}]   ;;  %s772_s1 = inlined_call_operand.vmem [shape: bf16[32,64], index: 1, kind: input, shape index: {}]   ;;  %s773_s2 = inlined_call_operand.vmem [shape: f32[32,1], index: 2, kind: input, shape index: {}]   ;;  %s774_s4 = inlined_call_operand.vmem [shape: f32[32,1], index: 4, kind: input, shape index: {}]   ;;  %s775_s6 = inlined_call_operand.vmem [shape: f32[32,1], index: 6, kind: input, shape index: {}]   ;;  %s776_s3 = inlined_call_operand.vmem [shape: bf16[32,32], index: 3, kind: input, shape index: {}]   ;;  %s777_s5 = inlined_call_operand.vmem [shape: bf16[32,32], index: 5, kind: input, shape index: {}]   ;;  %s778_s7 = inlined_call_operand.vmem [shape: bf16[8,32], index: 7, kind: input, shape index: {}]   ;;  %s779_s8 = inlined_call_operand.vmem [shape: f32[2,8], index: 8, kind: input, shape index: {}]   ;;  %s780_s10 = inlined_call_operand.vmem [shape: f32[1,128], index: 10, kind: output, shape index: {}]  }
   0x1   :  { %v611_v0 = vld [vmem:[%s770_s0] sm:$0xff]   ;;  %609 = vset.pattern.permute.xlu0 %v627_v1  ;;  %610 = vset.pattern.permute.xlu1 %v627_v1  ;;  %v15_v2 = vstv %s771_s9  ;;  %v612_v3 = vld [vmem:[%s770_s0 + $0x8] sm:$0xff]   ;;  %v613_v4 = vld [vmem:[%s770_s0 + $0x10] sm:$0xff]   ;;  %vm629_vm2 = vmmov 0   ;;  %vm443_vm3 = vcmask 64512  }
   0x2   :  { %16 = vst [vmem:[#allocation2] sm:$0x1] %v15_v2  ;;  %565 = vmatprep.subr.bf16.mxu0 %v611_v0  ;;  %v615_v5 = vld [vmem:[%s772_s1] sm:$0xff]   ;;  %v52_v7 = vld [vmem:[%s773_s2 + $0x10] sm:$0xff]  ;;  %v614_v8 = vld [vmem:[%s770_s0 + $0x18] sm:$0xff]  }
   0x3   :  { %566 = vmatpush3.bf16.msra.mxu0 %v611_v0  ;;  %573 = vmatprep.mubr.msk.bf16.mxu0 %vm108_vm0, %v615_v5  ;;  %v50_v6 = vld [vmem:[%s773_s2] sm:$0xff]  ;;  %v51_v9 = vld [vmem:[%s773_s2 + $0x8] sm:$0xff]  ;;  %v53_v10 = vld [vmem:[%s773_s2 + $0x18] sm:$0xff] }
   0x4   :  { %567 = vmatprep.subr.bf16.mxu0 %v612_v3  ;;  %56 = vperm.xlu0 %609, %v50_v6   ;;  %v174_v11 = vld [vmem:[%s774_s4] sm:$0xff]  ;;  %v175_v12 = vld [vmem:[%s774_s4 + $0x8] sm:$0xff]  ;;  %v176_v14 = vld [vmem:[%s774_s4 + $0x10] sm:$0xff] }
   0x5   :  { %66 = vperm.xlu1 %610, %v52_v7   ;;  %v616_v13 = vld [vmem:[%s772_s1 + $0x8] sm:$0xff]   ;;  %v177_v15 = vld [vmem:[%s774_s4 + $0x18] sm:$0xff]  ;;  %v274_v16 = vld [vmem:[%s775_s6] sm:$0xff] }
   0x6   :  { %v275_v17 = vld [vmem:[%s775_s6 + $0x8] sm:$0xff]  ;;  %v276_v18 = vld [vmem:[%s775_s6 + $0x10] sm:$0xff]  ;;  %v277_v19 = vld [vmem:[%s775_s6 + $0x18] sm:$0xff] }
   0x7   :  { %568 = vmatpush3.bf16.msra.mxu0 %v612_v3  ;;  %v617_v21 = vld [vmem:[%s776_s3] sm:$0xff]   ;;  %v618_v40 = vld [vmem:[%s776_s3 + $0x8] sm:$0xff]  }
   0x8   :  { %569 = vmatprep.subr.bf16.mxu0 %v613_v4  ;;  %61 = vperm.xlu0 %609, %v51_v9   ;;  %v619_v41 = vld [vmem:[%s777_s5] sm:$0xff]   ;;  %v620_v60 = vld [vmem:[%s777_s5 + $0x8] sm:$0xff]  }
   0x9   :  { %71 = vperm.xlu1 %610, %v53_v10   ;;  %v544_v20 = vld [vmem:[#allocation2] ss:$0 sm:$0xff]  ;;  %581 = vmatprep.mubr.msk.bf16.mxu1 %vm208_vm1, %v617_v21 }
   0xb   :  { %570 = vmatpush3.bf16.msra.mxu0 %v613_v4 }
   0xc   :  { %571 = vmatprep.subr.bf16.mxu0 %v614_v8  ;;  %180 = vperm.xlu0 %609, %v174_v11  }
   0xd   :  { %185 = vperm.xlu1 %610, %v175_v12  }
   0xf   :  { %572 = vmatpush3.bf16.msra.mxu0 %v614_v8 }
  0x10   :  { %190 = vperm.xlu0 %609, %v176_v14   ;;  %593 = vmatprep.subr.bf16.mxu0 %v628_v61 }
  0x11   :  { %195 = vperm.xlu1 %610, %v177_v15  }
  0x12   :  { %574 = vmatmul.mubr.msk.bf16.vlgmr.msra.gmra.mrb[0].mxu0 %vm108_vm0, %v616_v13 }
  0x13   :  { %597 = vmatprep.mubr.msk.bf16.mxu0 %vm629_vm2, %v628_v61 }
  0x14   :  { %280 = vperm.xlu0 %609, %v274_v16  }
  0x15   :  { %285 = vperm.xlu1 %610, %v275_v17  }
  0x18   :  { %290 = vperm.xlu0 %609, %v276_v18  }
  0x19   :  { %295 = vperm.xlu1 %610, %v277_v19  }
  0x1c   :  { %435 = vperm.xlu0 %609, %v544_v20  }
  0x83   :  { %v57_v23 = vpop.permute.xlu0 %56 }
  0x84   :  { %v67_v22 = vpop.permute.xlu1 %66 }
  0x87   :  { %v62_v30 = vpop.permute.xlu0 %61 }
  0x88   :  { %v72_v27 = vpop.permute.xlu1 %71 }
  0x8b   :  { %v181_v42 = vpop.permute.xlu0 %180 }
  0x8c   :  { %v186_v43 = vpop.permute.xlu1 %185 }
  0x8f   :  { %v191_v44 = vpop.permute.xlu0 %190 }
  0x90   :  { %v196_v48 = vpop.permute.xlu1 %195 }
  0x93   :  { %v281_v62 = vpop.permute.xlu0 %280 }
  0x94   :  { %v286_v63 = vpop.permute.xlu1 %285 }
  0x97   :  { %v291_v4 = vpop.permute.xlu0 %290 }
  0x98   :  { %v296_v8 = vpop.permute.xlu1 %295 }
  0xe5   :  { %v575_v24 = vpop.f32.mrb[0].mxu0 }
  0xe6   :  { %v158_v25 = vadd.f32 %v575_v24, %v67_v22  ;;  %v149_v26 = vpop.f32.mrb[1].mxu0 }
  0xe7   :  { %v150_v28 = vadd.f32 %v149_v26, %v57_v23  ;;  %v576_v29 = vpop.f32.mrb[2].mxu0 }
  0xe8   :  { %v161_v31 = vadd.f32 %v576_v29, %v72_v27  ;;  %v152_v32 = vpop.f32.mrb[3].mxu0  ;;  %v166_v34 = vmax.f32 %v158_v25, 0.0 }
  0xe9   :  { %v153_v33 = vadd.f32 %v152_v32, %v62_v30  ;;  %v164_v36 = vmax.f32 %v150_v28, 0.0  ;;  %v436_v32 = vpop.permute.xlu0 %435 }
  0xea   :  { %v167_v35 = vmax.f32 %v161_v31, 0.0  ;;  %v382_v31 = vld [vmem:[%s778_s7] sm:$0xf] }
  0xeb   :  { %v165_v37 = vmax.f32 %v153_v33, 0.0 }
  0xec   :  { %v173_v38 = vpack.c.bf16 %v167_v35, %v166_v34 }
  0xed   :  { %v172_v39 = vpack.c.bf16 %v165_v37, %v164_v36 }
  0xef   :  { %577 = vmatprep.subr.bf16.mxu1 %v172_v39 }
  0xf0   :  { %578 = vmatpush3.bf16.msra.mxu1 %v172_v39 }
  0xf1   :  { %579 = vmatprep.subr.bf16.mxu1 %v173_v38 }
  0xf4   :  { %580 = vmatpush3.bf16.msra.mxu1 %v173_v38 }
  0xf7   :  { %582 = vmatmul.mubr.msk.bf16.vlgmr.msra.gmra.mrb[0].mxu1 %vm208_vm1, %v618_v40  ;;  %v442_v40 = vld [vmem:[%s779_s8] sm:$0x3] }
  0xf8   :  { %589 = vmatprep.mubr.msk.bf16.mxu1 %vm208_vm1, %v619_v41 }
 0x1ca   :  { %v583_v45 = vpop.f32.mrb[0].mxu1 }
 0x1cb   :  { %v258_v46 = vadd.f32 %v583_v45, %v191_v44  ;;  %v249_v47 = vpop.f32.mrb[1].mxu1 }
 0x1cc   :  { %v250_v49 = vadd.f32 %v249_v47, %v181_v42  ;;  %v584_v50 = vpop.f32.mrb[2].mxu1 }
 0x1cd   :  { %v261_v51 = vadd.f32 %v584_v50, %v196_v48  ;;  %v252_v52 = vpop.f32.mrb[3].mxu1  ;;  %v266_v54 = vmax.f32 %v258_v46, 0.0 }
 0x1ce   :  { %v253_v53 = vadd.f32 %v252_v52, %v186_v43  ;;  %v264_v56 = vmax.f32 %v250_v49, 0.0 }
 0x1cf   :  { %v267_v55 = vmax.f32 %v261_v51, 0.0 }
 0x1d0   :  { %v265_v57 = vmax.f32 %v253_v53, 0.0 }
 0x1d1   :  { %v273_v58 = vpack.c.bf16 %v267_v55, %v266_v54 }
 0x1d2   :  { %v272_v59 = vpack.c.bf16 %v265_v57, %v264_v56 }
 0x1d4   :  { %585 = vmatprep.subr.bf16.mxu1 %v272_v59 }
 0x1d5   :  { %586 = vmatpush3.bf16.msra.mxu1 %v272_v59 }
 0x1d6   :  { %587 = vmatprep.subr.bf16.mxu1 %v273_v58 }
 0x1d9   :  { %588 = vmatpush3.bf16.msra.mxu1 %v273_v58 }
 0x1da   :  { %601 = vmatprep.subr.mxu1 %v628_v61 }
 0x1dc   :  { %590 = vmatmul.mubr.msk.bf16.vlgmr.msra.gmra.mrb[4].mxu1 %vm208_vm1, %v620_v60 }
 0x1dd   :  { %603 = vmatprep.mubr.msk.f32.mxu1 %vm629_vm2, %v628_v61 }
 0x2af   :  { %v591_v0 = vpop.f32.mrb[4].mxu1 }
 0x2b0   :  { %v348_v1 = vpop.f32.mrb[5].mxu1  ;;  %v357_v6 = vadd.f32 %v591_v0, %v291_v4 }
 0x2b1   :  { %v349_v2 = vadd.f32 %v348_v1, %v281_v62  ;;  %v592_v3 = vpop.f32.mrb[6].mxu1 }
 0x2b2   :  { %v351_v5 = vpop.f32.mrb[7].mxu1  ;;  %v360_v10 = vadd.f32 %v592_v3, %v296_v8  ;;  %v365_v12 = vmul.f32 %v357_v6, %v357_v6 }
 0x2b3   :  { %v352_v7 = vadd.f32 %v351_v5, %v286_v63  ;;  %v363_v9 = vmul.f32 %v349_v2, %v349_v2 }
 0x2b4   :  { %v366_v14 = vmul.f32 %v360_v10, %v360_v10 }
 0x2b5   :  { %v364_v11 = vmul.f32 %v352_v7, %v352_v7 }
 0x2b7   :  { %v367_v13 = vadd.f32 %v364_v11, %v363_v9 }
 0x2b9   :  { %v368_v15 = vadd.f32 %v367_v13, %v365_v12 }
 0x2bb   :  { %v369_v16 = vadd.f32 %v368_v15, %v366_v14 }
 0x2bd   :  { %v370_v17 = vrot.slane %v369_v16, 4 }
 0x2bf   :  { %v371_v18 = vadd.f32 %v370_v17, %v369_v16 }
 0x2c1   :  { %v372_v19 = vrot.slane %v371_v18, 2 }
 0x2c3   :  { %v373_v20 = vadd.f32 %v372_v19, %v371_v18 }
 0x2c5   :  { %v374_v21 = vrot.slane %v373_v20, 1 }
 0x2c7   :  { %v375_v22 = vadd.f32 %v374_v21, %v373_v20 }
 0x2c9   :  { %v376_v23 = vmax.f32 %v375_v22, 1e-24 }
 0x2cb   :  { %621 = vrsqrt.f32 %v376_v23 }
 0x2d5   :  { %v622_v24 = vpop.eup %621 }
 0x2d6   :  { %v378_v25 = vmul.f32 %v622_v24, %v349_v2  ;;  %v379_v26 = vmul.f32 %v622_v24, %v352_v7  ;;  %v380_v27 = vmul.f32 %v622_v24, %v357_v6  ;;  %v381_v28 = vmul.f32 %v622_v24, %v360_v10 }
 0x2d8   :  { %v383_v29 = vpack.c.bf16 %v379_v26, %v378_v25  ;;  %v384_v30 = vpack.c.bf16 %v381_v28, %v380_v27 }
 0x2da   :  { %594 = vmatpush3.bf16.msra.mxu0 %v383_v29 }
 0x2db   :  { %595 = vmatprep.subr.bf16.mxu0 %v628_v61 }
 0x2de   :  { %596 = vmatpush3.bf16.msra.mxu0 %v384_v30 }
 0x2e1   :  { %598 = vmatmul.mubr.msk.bf16.vlgmr.msra.gmra.mrb[4].mxu0 %vm208_vm1, %v382_v31 }
 0x3b4   :  { %v422_v33 = vpop.f32.mrb[4].mxu0 }
 0x3b5   :  { %v438_v34 = vsub.f32 %v422_v33, %v436_v32  ;;  %v599_v35 = vpop.f32.mrb[5].mxu0 }
 0x3b6   :  { %v425_v36 = vpop.f32.mrb[6].mxu0 }
 0x3b7   :  { %v439_v37 = vmax.f32 %v438_v34, -80.0  ;;  %v600_v38 = vpop.f32.mrb[7].mxu0 }
 0x3b9   :  { %v440_v39 = vmul.f32 1.442695, %v439_v37 }
 0x3bb   :  { %623 = vpow2.f32 %v440_v39 }
 0x3c5   :  { %v624_v41 = vpop.eup %623 }
 0x3c6   :  { %602 = vmatpush3.msra.mxu1 %v624_v41 }
 0x3c7   :  { %604 = vmatmul.mubr.msk.f32.vlgmr.msra.gmra.mrb[8].mxu1 %vm443_vm3, %v442_v40 }
 0x49a   :  { %v513_v42 = vpop.f32.mrb[8].mxu1 }
 0x49b   :  { %625 = vrcp.f32 %v513_v42  ;;  %v605_v43 = vpop.f32.mrb[9].mxu1 }
 0x4a5   :  { %v626_v44 = vpop.eup %625 }
 0x4a6   :  { %v519_v45 = vrot.slane %v626_v44, 7 }
 0x4a8   :  { %v521_v46 = vmul.f32 %v519_v45, %v513_v42 }
 0x4aa   :  { %522 = vst [vmem:[%s780_s10 - $0x1] sm:$0x2] %v521_v46 }

</bundles_post_ra>
